<compile_context>
chip_gen: v7x
topology: tpu7x:2x2x1
jax: 0.10.0
libtpu: 0.0.40
codegen_flags: <defaults>
</compile_context>

<pallas_src>
import jax
import jax.numpy as jnp
from jax.experimental import pallas as pl
from jax.experimental.pallas import tpu as pltpu

_LANE = 128      # vreg lane width
_SUBLANE = 8     # vreg sublane count
_TILE_B = 256    # batch tile: multiple of 8, sized for v6e/v7x 256-wide MXU


def _round_up(x, m):
    return ((x + m - 1) // m) * m


def _leaky_relu(v, slope=0.2):
    return jnp.where(v > 0, v, slope * v)


def discriminator_kernel(x_ref,
                         w1_ref, b1_ref,
                         w2_ref, b2_ref,
                         w3_ref, b3_ref,
                         w4_ref, b4_ref,
                         o_ref):
    # Fused 4-layer MLP: bf16 operands on the MXU, f32 accumulation,
    # bias add + LeakyReLU in f32 on the VPU. One batch tile per grid step;
    # all weights stay resident in VMEM across the grid.
    x = x_ref[...]                                       # bf16 (TILE_B, IN_PAD)

    h = jnp.dot(x, w1_ref[...], preferred_element_type=jnp.float32) + b1_ref[...]
    h = _leaky_relu(h)
    # Dropout(p=0.25): identity in inference mode.

    h = jnp.dot(h.astype(jnp.bfloat16), w2_ref[...],
                preferred_element_type=jnp.float32) + b2_ref[...]
    h = _leaky_relu(h)
    # Dropout(p=0.25): identity in inference mode.

    h = jnp.dot(h.astype(jnp.bfloat16), w3_ref[...],
                preferred_element_type=jnp.float32) + b3_ref[...]
    h = _leaky_relu(h)

    out = jnp.dot(h.astype(jnp.bfloat16), w4_ref[...],
                  preferred_element_type=jnp.float32) + b4_ref[...]
    o_ref[...] = out.astype(o_ref.dtype)                 # lane-dense store


def discriminator_forward(x, params):
    """x: (B, 2*H) float32.  params: dict of weights in x @ W layout (f32)."""
    B, in_dim = x.shape
    H = params["w1"].shape[1]
    out_dim = params["w4"].shape[1]

    # Pad every feature dim to the 128-lane width (zeros are exact no-ops for
    # the matmuls and LeakyReLU(0) == 0, so padded columns stay zero).
    in_pad = _round_up(in_dim, _LANE)
    h_pad = _round_up(H, _LANE)
    out_pad = _round_up(out_dim, _LANE)

    # Pad / tile the batch dimension.
    pB = _round_up(B, _SUBLANE)
    tile_b = pB if pB < _TILE_B else _TILE_B
    pB = _round_up(pB, tile_b)
    n_tiles = pB // tile_b

    x_p = jnp.zeros((pB, in_pad), jnp.bfloat16).at[:B, :in_dim].set(
        x.astype(jnp.bfloat16))

    def pad_w(w, r, c):
        return jnp.zeros((r, c), jnp.bfloat16).at[:w.shape[0], :w.shape[1]].set(
            w.astype(jnp.bfloat16))

    def pad_b(b, c):
        return jnp.zeros((1, c), jnp.float32).at[:, :b.shape[1]].set(
            b.astype(jnp.float32))

    w1 = pad_w(params["w1"], in_pad, h_pad); b1 = pad_b(params["b1"], h_pad)
    w2 = pad_w(params["w2"], h_pad, h_pad);  b2 = pad_b(params["b2"], h_pad)
    w3 = pad_w(params["w3"], h_pad, h_pad);  b3 = pad_b(params["b3"], h_pad)
    w4 = pad_w(params["w4"], h_pad, out_pad); b4 = pad_b(params["b4"], out_pad)

    resident = lambda shape: pl.BlockSpec(shape, lambda i: (0, 0))

    flops = 2 * B * (in_dim * H + H * H + H * H + H * out_dim)
    bytes_accessed = (x_p.size * 2
                      + (w1.size + w2.size + w3.size + w4.size) * 2
                      + (b1.size + b2.size + b3.size + b4.size) * 4
                      + pB * out_pad * 4)

    out_padded = pl.pallas_call(
        discriminator_kernel,
        out_shape=jax.ShapeDtypeStruct((pB, out_pad), jnp.float32),
        grid=(n_tiles,),
        in_specs=[
            pl.BlockSpec((tile_b, in_pad), lambda i: (i, 0)),   # x: batch-tiled
            resident(w1.shape), resident(b1.shape),             # weights: VMEM-resident
            resident(w2.shape), resident(b2.shape),
            resident(w3.shape), resident(b3.shape),
            resident(w4.shape), resident(b4.shape),
        ],
        out_specs=pl.BlockSpec((tile_b, out_pad), lambda i: (i, 0)),
        compiler_params=pltpu.CompilerParams(
            dimension_semantics=("parallel",)),                 # megacore on v7x
        cost_estimate=pl.CostEstimate(
            flops=flops, transcendentals=0, bytes_accessed=bytes_accessed),
    )(x_p, w1, b1, w2, b2, w3, b3, w4, b4)

    return out_padded[:B, :out_dim]


def init_params(key, hidden_size):
    """Deterministic synthetic init (uniform, torch-Linear-like scale).
    Weights stored transposed relative to torch (shape (in, out)) so the
    kernel computes x @ W + b."""
    H = hidden_size
    ks = jax.random.split(key, 8)

    def lin(kw, kb, fan_in, fan_out):
        bound = 1.0 / jnp.sqrt(fan_in)
        w = jax.random.uniform(kw, (fan_in, fan_out), jnp.float32, -bound, bound)
        b = jax.random.uniform(kb, (1, fan_out), jnp.float32, -bound, bound)
        return w, b

    w1, b1 = lin(ks[0], ks[1], 2 * H, H)
    w2, b2 = lin(ks[2], ks[3], H, H)
    w3, b3 = lin(ks[4], ks[5], H, H)
    w4, b4 = lin(ks[6], ks[7], H, 2)
    return {"w1": w1, "b1": b1, "w2": w2, "b2": b2,
            "w3": w3, "b3": b3, "w4": w4, "b4": b4}


def reference_forward(x, p):
    # Reference with the same bf16-operand / f32-accumulate numerics.
    bf = jnp.bfloat16

    def lin(h, w, b):
        return jnp.dot(h.astype(bf), w.astype(bf),
                       preferred_element_type=jnp.float32) + b

    h = _leaky_relu(lin(x, p["w1"], p["b1"]))
    h = _leaky_relu(lin(h, p["w2"], p["b2"]))
    h = _leaky_relu(lin(h, p["w3"], p["b3"]))
    return lin(h, p["w4"], p["b4"])


if __name__ == "__main__":
    hidden_size = 32   # options['hidden_size']
    batch = 8

    key = jax.random.PRNGKey(0)
    k_x, k_p = jax.random.split(key)

    x = jax.random.normal(k_x, (batch, 2 * hidden_size), dtype=jnp.float32)
    params = init_params(k_p, hidden_size)

    out = discriminator_forward(x, params)
    out = jax.block_until_ready(out)

    ref = reference_forward(x, params)
    assert out.shape == (batch, 2), out.shape
    assert jnp.allclose(out, ref, atol=2e-2, rtol=2e-2), "mismatch vs reference"

    print("KERNEL_OK")
</pallas_src>

<mosaic_0001>
module attributes {stable_mosaic.version = 11 : i64} {
  func.func @discriminator_kernel(%arg0: i32, %arg1: memref<8x128xbf16, #tpu.memory_space<vmem>>, %arg2: memref<128x128xbf16, #tpu.memory_space<vmem>>, %arg3: memref<1x128xf32, #tpu.memory_space<vmem>>, %arg4: memref<128x128xbf16, #tpu.memory_space<vmem>>, %arg5: memref<1x128xf32, #tpu.memory_space<vmem>>, %arg6: memref<128x128xbf16, #tpu.memory_space<vmem>>, %arg7: memref<1x128xf32, #tpu.memory_space<vmem>>, %arg8: memref<128x128xbf16, #tpu.memory_space<vmem>>, %arg9: memref<1x128xf32, #tpu.memory_space<vmem>>, %arg10: memref<8x128xf32, #tpu.memory_space<vmem>>) attributes {dimension_semantics = [#tpu.dimension_semantics<parallel>], iteration_bounds = array<i64: 1>, scalar_prefetch = 0 : i64, scratch_operands = 0 : i64, tpu.core_type = #tpu.core_type<tc>, window_params = [{transform_indices = @transform_0, window_bounds = array<i64: 8, 128>}, {pipeline_mode = #tpu.pipeline_mode<synchronous>, transform_indices = @transform_1, window_bounds = array<i64: 128, 128>}, {pipeline_mode = #tpu.pipeline_mode<synchronous>, transform_indices = @transform_2, window_bounds = array<i64: 1, 128>}, {pipeline_mode = #tpu.pipeline_mode<synchronous>, transform_indices = @transform_3, window_bounds = array<i64: 128, 128>}, {pipeline_mode = #tpu.pipeline_mode<synchronous>, transform_indices = @transform_4, window_bounds = array<i64: 1, 128>}, {pipeline_mode = #tpu.pipeline_mode<synchronous>, transform_indices = @transform_5, window_bounds = array<i64: 128, 128>}, {pipeline_mode = #tpu.pipeline_mode<synchronous>, transform_indices = @transform_6, window_bounds = array<i64: 1, 128>}, {pipeline_mode = #tpu.pipeline_mode<synchronous>, transform_indices = @transform_7, window_bounds = array<i64: 128, 128>}, {pipeline_mode = #tpu.pipeline_mode<synchronous>, transform_indices = @transform_8, window_bounds = array<i64: 1, 128>}, {transform_indices = @transform_9, window_bounds = array<i64: 8, 128>}]} {
    %c0 = arith.constant 0 : index
    %c0_0 = arith.constant 0 : index
    %0 = vector.load %arg1[%c0, %c0_0] : memref<8x128xbf16, #tpu.memory_space<vmem>>, vector<8x128xbf16>
    %c0_1 = arith.constant 0 : index
    %c0_2 = arith.constant 0 : index
    %1 = vector.load %arg2[%c0_1, %c0_2] : memref<128x128xbf16, #tpu.memory_space<vmem>>, vector<128x128xbf16>
    %cst = arith.constant dense<0.000000e+00> : vector<8x128xf32>
    %2 = tpu.matmul %0, %1, %cst {dimension_numbers = #tpu.dot_dimension_numbers<[1], [0], [0], [1], [0, 0, 1, 1], [], []>} : vector<8x128xbf16>, vector<128x128xbf16>, vector<8x128xf32> -> vector<8x128xf32>
    %c0_3 = arith.constant 0 : index
    %c0_4 = arith.constant 0 : index
    %3 = vector.load %arg3[%c0_3, %c0_4] : memref<1x128xf32, #tpu.memory_space<vmem>>, vector<1x128xf32>
    %4 = vector.broadcast %3 : vector<1x128xf32> to vector<8x128xf32>
    %5 = arith.addf %2, %4 : vector<8x128xf32>
    %cst_5 = arith.constant 0.000000e+00 : f32
    %6 = vector.broadcast %cst_5 : f32 to vector<8x128xf32>
    %7 = arith.cmpf ogt, %5, %6 : vector<8x128xf32>
    %cst_6 = arith.constant 2.000000e-01 : f32
    %8 = vector.broadcast %cst_6 : f32 to vector<8x128xf32>
    %9 = arith.mulf %8, %5 : vector<8x128xf32>
    %10 = arith.select %7, %5, %9 : vector<8x128xi1>, vector<8x128xf32>
    %11 = arith.truncf %10 : vector<8x128xf32> to vector<8x128xbf16>
    %c0_7 = arith.constant 0 : index
    %c0_8 = arith.constant 0 : index
    %12 = vector.load %arg4[%c0_7, %c0_8] : memref<128x128xbf16, #tpu.memory_space<vmem>>, vector<128x128xbf16>
    %cst_9 = arith.constant dense<0.000000e+00> : vector<8x128xf32>
    %13 = tpu.matmul %11, %12, %cst_9 {dimension_numbers = #tpu.dot_dimension_numbers<[1], [0], [0], [1], [0, 0, 1, 1], [], []>} : vector<8x128xbf16>, vector<128x128xbf16>, vector<8x128xf32> -> vector<8x128xf32>
    %c0_10 = arith.constant 0 : index
    %c0_11 = arith.constant 0 : index
    %14 = vector.load %arg5[%c0_10, %c0_11] : memref<1x128xf32, #tpu.memory_space<vmem>>, vector<1x128xf32>
    %15 = vector.broadcast %14 : vector<1x128xf32> to vector<8x128xf32>
    %16 = arith.addf %13, %15 : vector<8x128xf32>
    %cst_12 = arith.constant 0.000000e+00 : f32
    %17 = vector.broadcast %cst_12 : f32 to vector<8x128xf32>
    %18 = arith.cmpf ogt, %16, %17 : vector<8x128xf32>
    %cst_13 = arith.constant 2.000000e-01 : f32
    %19 = vector.broadcast %cst_13 : f32 to vector<8x128xf32>
    %20 = arith.mulf %19, %16 : vector<8x128xf32>
    %21 = arith.select %18, %16, %20 : vector<8x128xi1>, vector<8x128xf32>
    %22 = arith.truncf %21 : vector<8x128xf32> to vector<8x128xbf16>
    %c0_14 = arith.constant 0 : index
    %c0_15 = arith.constant 0 : index
    %23 = vector.load %arg6[%c0_14, %c0_15] : memref<128x128xbf16, #tpu.memory_space<vmem>>, vector<128x128xbf16>
    %cst_16 = arith.constant dense<0.000000e+00> : vector<8x128xf32>
    %24 = tpu.matmul %22, %23, %cst_16 {dimension_numbers = #tpu.dot_dimension_numbers<[1], [0], [0], [1], [0, 0, 1, 1], [], []>} : vector<8x128xbf16>, vector<128x128xbf16>, vector<8x128xf32> -> vector<8x128xf32>
    %c0_17 = arith.constant 0 : index
    %c0_18 = arith.constant 0 : index
    %25 = vector.load %arg7[%c0_17, %c0_18] : memref<1x128xf32, #tpu.memory_space<vmem>>, vector<1x128xf32>
    %26 = vector.broadcast %25 : vector<1x128xf32> to vector<8x128xf32>
    %27 = arith.addf %24, %26 : vector<8x128xf32>
    %cst_19 = arith.constant 0.000000e+00 : f32
    %28 = vector.broadcast %cst_19 : f32 to vector<8x128xf32>
    %29 = arith.cmpf ogt, %27, %28 : vector<8x128xf32>
    %cst_20 = arith.constant 2.000000e-01 : f32
    %30 = vector.broadcast %cst_20 : f32 to vector<8x128xf32>
    %31 = arith.mulf %30, %27 : vector<8x128xf32>
    %32 = arith.select %29, %27, %31 : vector<8x128xi1>, vector<8x128xf32>
    %33 = arith.truncf %32 : vector<8x128xf32> to vector<8x128xbf16>
    %c0_21 = arith.constant 0 : index
    %c0_22 = arith.constant 0 : index
    %34 = vector.load %arg8[%c0_21, %c0_22] : memref<128x128xbf16, #tpu.memory_space<vmem>>, vector<128x128xbf16>
    %cst_23 = arith.constant dense<0.000000e+00> : vector<8x128xf32>
    %35 = tpu.matmul %33, %34, %cst_23 {dimension_numbers = #tpu.dot_dimension_numbers<[1], [0], [0], [1], [0, 0, 1, 1], [], []>} : vector<8x128xbf16>, vector<128x128xbf16>, vector<8x128xf32> -> vector<8x128xf32>
    %c0_24 = arith.constant 0 : index
    %c0_25 = arith.constant 0 : index
    %36 = vector.load %arg9[%c0_24, %c0_25] : memref<1x128xf32, #tpu.memory_space<vmem>>, vector<1x128xf32>
    %37 = vector.broadcast %36 : vector<1x128xf32> to vector<8x128xf32>
    %38 = arith.addf %35, %37 : vector<8x128xf32>
    %c0_26 = arith.constant 0 : index
    %c0_27 = arith.constant 0 : index
    %39 = vector.load %arg10[%c0_26, %c0_27] : memref<8x128xf32, #tpu.memory_space<vmem>>, vector<8x128xf32>
    tpu.vector_store %arg10[%c0_26, %c0_27], %38 {strides = array<i32>} : memref<8x128xf32, #tpu.memory_space<vmem>>, vector<8x128xf32>,
    return
  }
  func.func @transform_0(%arg0: i32) -> (i32, i32) {
    %c0_i32 = arith.constant 0 : i32
    %c0_i32_0 = arith.constant 0 : i32
    return %arg0, %c0_i32 : i32, i32
  }
  func.func @transform_1(%arg0: i32) -> (i32, i32) {
    %c0_i32 = arith.constant 0 : i32
    %c0_i32_0 = arith.constant 0 : i32
    %c0_i32_1 = arith.constant 0 : i32
    return %c0_i32, %c0_i32_0 : i32, i32
  }
  func.func @transform_2(%arg0: i32) -> (i32, i32) {
    %c0_i32 = arith.constant 0 : i32
    %c0_i32_0 = arith.constant 0 : i32
    %c0_i32_1 = arith.constant 0 : i32
    return %c0_i32, %c0_i32_0 : i32, i32
  }
  func.func @transform_3(%arg0: i32) -> (i32, i32) {
    %c0_i32 = arith.constant 0 : i32
    %c0_i32_0 = arith.constant 0 : i32
    %c0_i32_1 = arith.constant 0 : i32
    return %c0_i32, %c0_i32_0 : i32, i32
  }
  func.func @transform_4(%arg0: i32) -> (i32, i32) {
    %c0_i32 = arith.constant 0 : i32
    %c0_i32_0 = arith.constant 0 : i32
    %c0_i32_1 = arith.constant 0 : i32
    return %c0_i32, %c0_i32_0 : i32, i32
  }
  func.func @transform_5(%arg0: i32) -> (i32, i32) {
    %c0_i32 = arith.constant 0 : i32
    %c0_i32_0 = arith.constant 0 : i32
    %c0_i32_1 = arith.constant 0 : i32
    return %c0_i32, %c0_i32_0 : i32, i32
  }
  func.func @transform_6(%arg0: i32) -> (i32, i32) {
    %c0_i32 = arith.constant 0 : i32
    %c0_i32_0 = arith.constant 0 : i32
    %c0_i32_1 = arith.constant 0 : i32
    return %c0_i32, %c0_i32_0 : i32, i32
  }
  func.func @transform_7(%arg0: i32) -> (i32, i32) {
    %c0_i32 = arith.constant 0 : i32
    %c0_i32_0 = arith.constant 0 : i32
    %c0_i32_1 = arith.constant 0 : i32
    return %c0_i32, %c0_i32_0 : i32, i32
  }
  func.func @transform_8(%arg0: i32) -> (i32, i32) {
    %c0_i32 = arith.constant 0 : i32
    %c0_i32_0 = arith.constant 0 : i32
    %c0_i32_1 = arith.constant 0 : i32
    return %c0_i32, %c0_i32_0 : i32, i32
  }
  func.func @transform_9(%arg0: i32) -> (i32, i32) {
    %c0_i32 = arith.constant 0 : i32
    %c0_i32_0 = arith.constant 0 : i32
    return %arg0, %c0_i32 : i32, i32
  }
}

</mosaic_0001>

<bundles_post_ra>
// kernel: tpu_custom_call.1
= control target key start
LH: loop header
LB: loop body
LE: loop exit
PB: predicated region body
PF: predicated region fallthrough
CT: control target
= control target key end

     0   :  { %14 = vsyncpa [#allocation3], 0  ;;  %s1105_s0 = inlined_call_operand.hbm [shape: bf16[8,128], index: 0, kind: input, shape index: {}]   ;;  %s1106_s1 = inlined_call_operand.hbm [shape: bf16[128,128], index: 1, kind: input, shape index: {}]   ;;  %s1107_s2 = inlined_call_operand.vmem [shape: f32[1,128], index: 2, kind: input, shape index: {}]   ;;  %s1108_s3 = inlined_call_operand.hbm [shape: bf16[128,128], index: 3, kind: input, shape index: {}]   ;;  %s1109_s4 = inlined_call_operand.vmem [shape: f32[1,128], index: 4, kind: input, shape index: {}]   ;;  %s1110_s5 = inlined_call_operand.hbm [shape: bf16[128,128], index: 5, kind: input, shape index: {}]   ;;  %s1111_s6 = inlined_call_operand.vmem [shape: f32[1,128], index: 6, kind: input, shape index: {}]   ;;  %s1112_s7 = inlined_call_operand.hbm [shape: bf16[128,128], index: 7, kind: input, shape index: {}]   ;;  %s1113_s8 = inlined_call_operand.vmem [shape: f32[1,128], index: 8, kind: input, shape index: {}]   ;;  %s1114_s9 = inlined_call_operand.hbm [shape: f32[8,128], index: 9, kind: output, shape index: {}]  }
   0x1   :  { %15 = vsyncpa [#allocation6], 0 }
   0x2   :  { %16 = vsyncpa [#allocation9], 0 }
   0x3   :  { %17 = vsyncpa [#allocation4], 0  ;;  %s909_s30 = smov [#allocation5]   ;;  %s769_s13 = scalar_lea.hbm %s1106_s1, 1024 }
   0x4   :  { %s33_s10 = sshll.u32 %s909_s30, 4  ;;  %p770_p0 = scmp.ne.s32.totalorder %s1106_s1, %s769_s13  ;;  %s34_s10 = int_to_ptr.vmem [resolvable:$true] %s33_s10 }
   0x5   :  { %p773_p1 = scmp.lt.u32.totalorder %s769_s13, %s1106_s1 }
   0x7   :  { %p775_p2 = pnand %p773_p1, %p770_p0 }
   0x9   :  { %778 = shalt.err (!%p775_p2)
}
   0xa   :  { %s779_s18 = scalar_lea.vmem %s34_s10, 1024  ;;  %p784_p4 = scmp.lt.s32.totalorder %s34_s10, %s34_s10 }
   0xb   :  { %p780_p3 = scmp.ne.s32.totalorder %s34_s10, %s779_s18  ;;  %p785_p5 = scmp.lt.s32.totalorder %s779_s18, %s779_s18 }
   0xd   :  { %p786_p6 = por %p785_p5, %p784_p4 }
   0xf   :  { %p787_p7 = pnand %p786_p6, %p780_p3 }
  0x11   :  { %790 = shalt.err (!%p787_p7)
}
  0x12   :  { %s910_s19 = smov 64   ;;  %s911_s20 = smov 4  }
  0x13   :  { %39 = dma.hbm_to_vmem [thread:$0]  %s1106_s1, 1024, %s34_s10, [#allocation6], %s910_s19, %s910_s19, %s911_s20  }
  0x14   :  { %s912_s23 = smov [#allocation8]   ;;  %s913_s25 = smov [#allocation2]  }
  0x15   :  { %s61_s24 = sshll.u32 %s912_s23, 4  ;;  %s24_s26 = sshll.u32 %s913_s25, 4  ;;  %s62_s24 = int_to_ptr.vmem [resolvable:$true] %s61_s24  ;;  %s25_s26 = int_to_ptr.vmem [resolvable:$true] %s24_s26 }
  0x16   :  { %s791_s29 = scalar_lea.hbm %s1110_s5, 1024 }
  0x17   :  { %p792_p8 = scmp.ne.s32.totalorder %s1110_s5, %s791_s29  ;;  %p795_p9 = scmp.lt.u32.totalorder %s791_s29, %s1110_s5 }
  0x19   :  { %p797_p10 = pnand %p795_p9, %p792_p8 }
  0x1b   :  { %800 = shalt.err (!%p797_p10)
}
  0x1c   :  { %s801_s1 = scalar_lea.vmem %s62_s24, 1024  ;;  %p806_p12 = scmp.lt.s32.totalorder %s62_s24, %s62_s24 }
  0x1d   :  { %p802_p11 = scmp.ne.s32.totalorder %s62_s24, %s801_s1  ;;  %p807_p13 = scmp.lt.s32.totalorder %s801_s1, %s801_s1 }
  0x1f   :  { %p808_p0 = por %p807_p13, %p806_p12 }
  0x21   :  { %p809_p1 = pnand %p808_p0, %p802_p11 }
  0x23   :  { %812 = shalt.err (!%p809_p1)
}
  0x24   :  { %67 = dma.hbm_to_vmem [thread:$0]  %s1110_s5, 1024, %s62_s24, [#allocation9], %s910_s19, %s910_s19, %s911_s20  }
  0x25   :  { %s813_s17 = scalar_lea.hbm %s1105_s0, 64 }
  0x26   :  { %p814_p2 = scmp.ne.s32.totalorder %s1105_s0, %s813_s17  ;;  %p817_p3 = scmp.lt.u32.totalorder %s813_s17, %s1105_s0 }
  0x28   :  { %p819_p4 = pnand %p817_p3, %p814_p2 }
  0x2a   :  { %822 = shalt.err (!%p819_p4)
}
  0x2b   :  { %s823_s25 = scalar_lea.vmem %s25_s26, 64  ;;  %p828_p6 = scmp.lt.s32.totalorder %s25_s26, %s25_s26 }
  0x2c   :  { %p824_p5 = scmp.ne.s32.totalorder %s25_s26, %s823_s25  ;;  %p829_p7 = scmp.lt.s32.totalorder %s823_s25, %s823_s25 }
  0x2e   :  { %p830_p8 = por %p829_p7, %p828_p6 }
  0x30   :  { %p831_p9 = pnand %p830_p8, %p824_p5 }
  0x32   :  { %834 = shalt.err (!%p831_p9)
}
  0x33   :  { %27 = dma.hbm_to_vmem [thread:$0]  %s1105_s0, 64, %s25_s26, [#allocation3]  }
  0x34   :  { %s914_s27 = smov [#allocation7]   ;;  %s915_s29 = smov [#allocation10]  }
  0x35   :  { %s47_s28 = sshll.u32 %s914_s27, 4  ;;  %s75_s30 = sshll.u32 %s915_s29, 4  ;;  %s48_s28 = int_to_ptr.vmem [resolvable:$true] %s47_s28  ;;  %s76_s30 = int_to_ptr.vmem [resolvable:$true] %s75_s30 }
  0x36   :  { %s835_s13 = scalar_lea.hbm %s1108_s3, 1024 }
  0x37   :  { %p836_p10 = scmp.ne.s32.totalorder %s1108_s3, %s835_s13  ;;  %p839_p11 = scmp.lt.u32.totalorder %s835_s13, %s1108_s3 }
  0x39   :  { %p841_p12 = pnand %p839_p11, %p836_p10 }
  0x3b   :  { %844 = shalt.err (!%p841_p12)
}
  0x3c   :  { %s845_s0 = scalar_lea.vmem %s48_s28, 1024  ;;  %p850_p0 = scmp.lt.s32.totalorder %s48_s28, %s48_s28 }
  0x3d   :  { %p846_p13 = scmp.ne.s32.totalorder %s48_s28, %s845_s0  ;;  %p851_p1 = scmp.lt.s32.totalorder %s845_s0, %s845_s0 }
  0x3f   :  { %p852_p2 = por %p851_p1, %p850_p0 }
  0x41   :  { %p853_p3 = pnand %p852_p2, %p846_p13 }
  0x43   :  { %856 = shalt.err (!%p853_p3)
}
  0x44   :  { %53 = dma.hbm_to_vmem [thread:$0]  %s1108_s3, 1024, %s48_s28, [#allocation6], %s910_s19, %s910_s19, %s911_s20  }
  0x45   :  { %s857_s21 = scalar_lea.hbm %s1112_s7, 1024 }
  0x46   :  { %p858_p4 = scmp.ne.s32.totalorder %s1112_s7, %s857_s21  ;;  %p861_p5 = scmp.lt.u32.totalorder %s857_s21, %s1112_s7 }
  0x48   :  { %p863_p6 = pnand %p861_p5, %p858_p4 }
  0x4a   :  { %866 = shalt.err (!%p863_p6)
}
  0x4b   :  { %s867_s24 = scalar_lea.vmem %s76_s30, 1024  ;;  %p872_p8 = scmp.lt.s32.totalorder %s76_s30, %s76_s30 }
  0x4c   :  { %p868_p7 = scmp.ne.s32.totalorder %s76_s30, %s867_s24  ;;  %p873_p9 = scmp.lt.s32.totalorder %s867_s24, %s867_s24 }
  0x4e   :  { %p874_p10 = por %p873_p9, %p872_p8 }
  0x50   :  { %p875_p11 = pnand %p874_p10, %p868_p7 }
  0x52   :  { %878 = shalt.err (!%p875_p11)
}
  0x53   :  { %81 = dma.hbm_to_vmem [thread:$0]  %s1112_s7, 1024, %s76_s30, [#allocation9], %s910_s19, %s910_s19, %s911_s20  }
  0x54   :  { %901 = dma.done.wait [#allocation3], 64  }
  0x55   :  { %902 = vsyncadd [#allocation3], 4294967232 }
  0x56   :  { %903 = dma.done.wait [#allocation6], 2048  }
  0x57   :  { %904 = vsyncadd [#allocation6], 4294965248 }
  0x58   :  { %905 = dma.done.wait [#allocation9], 2048  }
  0x59   :  { %906 = vsyncadd [#allocation9], 4294965248  ;;  %v916_v0 = vmov 0.0   ;;  %vm917_vm0 = vmmov 0   ;;  %v737_v1 = vld [vmem:[#allocation5] sm:$0xff]   ;;  %v738_v2 = vld [vmem:[#allocation5 + $0x8] sm:$0xff]  }
  0x5a   :  { %647 = vmatprep.subr.bf16.mxu0 %v916_v0  ;;  %663 = vmatprep.mubr.msk.bf16.mxu0 %vm917_vm0, %v916_v0  ;;  %v739_v3 = vld [vmem:[#allocation5 + $0x10] sm:$0xff]   ;;  %v745_v4 = vld [vmem:[#allocation7] sm:$0xff]   ;;  %v740_v5 = vld [vmem:[#allocation5 + $0x18] sm:$0xff]   ;;  %s918_s11 = smov [#allocation11]  }
  0x5b   :  { %667 = vmatprep.subr.bf16.mxu1 %v916_v0  ;;  %683 = vmatprep.mubr.msk.bf16.mxu1 %vm917_vm0, %v916_v0  ;;  %v746_v6 = vld [vmem:[#allocation7 + $0x8] sm:$0xff]   ;;  %v741_v7 = vld [vmem:[#allocation5 + $0x20] sm:$0xff]   ;;  %v747_v8 = vld [vmem:[#allocation7 + $0x10] sm:$0xff]   ;;  %s564_s12 = sshll.u32 %s918_s11, 4  ;;  %s565_s12 = int_to_ptr.vmem [resolvable:$true] %s564_s12 }
  0x5c   :  { %648 = vmatpush3.bf16.msra.mxu0 %v737_v1  ;;  %668 = vmatpush3.bf16.msra.mxu1 %v745_v4  ;;  %v742_v9 = vld [vmem:[#allocation5 + $0x28] sm:$0xff]   ;;  %v748_v10 = vld [vmem:[#allocation7 + $0x18] sm:$0xff]   ;;  %v743_v11 = vld [vmem:[#allocation5 + $0x30] sm:$0xff]   ;;  %p884_p13 = scmp.lt.s32.totalorder %s565_s12, %s565_s12 }
  0x5d   :  { %649 = vmatprep.subr.bf16.mxu0 %v916_v0  ;;  %669 = vmatprep.subr.bf16.mxu1 %v916_v0  ;;  %v749_v12 = vld [vmem:[#allocation7 + $0x20] sm:$0xff]   ;;  %v744_v13 = vld [vmem:[#allocation5 + $0x38] sm:$0xff]   ;;  %v750_v14 = vld [vmem:[#allocation7 + $0x28] sm:$0xff]  }
  0x5e   :  { %v100_v15 = vld [vmem:[#allocation2] sm:$0xf]  ;;  %v751_v16 = vld [vmem:[#allocation7 + $0x30] sm:$0xff]   ;;  %v753_v18 = vld [vmem:[#allocation8] sm:$0xff]  }
  0x5f   :  { %v752_v17 = vld [vmem:[#allocation7 + $0x38] sm:$0xff]   ;;  %v754_v19 = vld [vmem:[#allocation8 + $0x8] sm:$0xff]   ;;  %v755_v20 = vld [vmem:[#allocation8 + $0x10] sm:$0xff]  }
  0x60   :  { %650 = vmatpush3.bf16.msra.mxu0 %v738_v2  ;;  %670 = vmatpush3.bf16.msra.mxu1 %v746_v6  ;;  %v756_v21 = vld [vmem:[#allocation8 + $0x18] sm:$0xff]   ;;  %v757_v22 = vld [vmem:[#allocation8 + $0x20] sm:$0xff]   ;;  %v758_v23 = vld [vmem:[#allocation8 + $0x28] sm:$0xff]  }
  0x61   :  { %651 = vmatprep.subr.bf16.mxu0 %v916_v0  ;;  %671 = vmatprep.subr.bf16.mxu1 %v916_v0  ;;  %v575_v24 = vld [vmem:[%s1107_s2] ss:$0 sm:$0xff]  ;;  %v759_v33 = vld [vmem:[#allocation8 + $0x30] sm:$0xff]   ;;  %v761_v35 = vld [vmem:[#allocation10] sm:$0xff]  }
  0x62   :  { %v760_v34 = vld [vmem:[#allocation8 + $0x38] sm:$0xff]   ;;  %v762_v36 = vld [vmem:[#allocation10 + $0x8] sm:$0xff]   ;;  %v763_v37 = vld [vmem:[#allocation10 + $0x10] sm:$0xff]  }
  0x63   :  { %v764_v38 = vld [vmem:[#allocation10 + $0x18] sm:$0xff]   ;;  %v765_v39 = vld [vmem:[#allocation10 + $0x20] sm:$0xff]   ;;  %v766_v40 = vld [vmem:[#allocation10 + $0x28] sm:$0xff]  }
  0x64   :  { %652 = vmatpush3.bf16.msra.mxu0 %v739_v3  ;;  %672 = vmatpush3.bf16.msra.mxu1 %v747_v8  ;;  %v584_v41 = vld [vmem:[%s1109_s4] ss:$0 sm:$0xff]  ;;  %v767_v50 = vld [vmem:[#allocation10 + $0x30] sm:$0xff]  }
  0x65   :  { %653 = vmatprep.subr.bf16.mxu0 %v916_v0  ;;  %673 = vmatprep.subr.bf16.mxu1 %v916_v0  ;;  %v768_v51 = vld [vmem:[#allocation10 + $0x38] sm:$0xff]  }
  0x66   :  { %v593_v52 = vld [vmem:[%s1111_s6] ss:$0 sm:$0xff]  ;;  %s879_s6 = scalar_lea.vmem %s565_s12, 128 }
  0x67   :  { %v602_v61 = vld [vmem:[%s1113_s8] ss:$0 sm:$0xff]  ;;  %p880_p12 = scmp.ne.s32.totalorder %s565_s12, %s879_s6  ;;  %p885_p0 = scmp.lt.s32.totalorder %s879_s6, %s879_s6 }
  0x68   :  { %654 = vmatpush3.bf16.msra.mxu0 %v740_v5  ;;  %674 = vmatpush3.bf16.msra.mxu1 %v748_v10 }
  0x69   :  { %655 = vmatprep.subr.bf16.mxu0 %v916_v0  ;;  %675 = vmatprep.subr.bf16.mxu1 %v916_v0  ;;  %p886_p1 = por %p885_p0, %p884_p13 }
  0x6b   :  { %p887_p2 = pnand %p886_p1, %p880_p12 }
  0x6c   :  { %656 = vmatpush3.bf16.msra.mxu0 %v741_v7  ;;  %676 = vmatpush3.bf16.msra.mxu1 %v749_v12 }
  0x6d   :  { %657 = vmatprep.subr.bf16.mxu0 %v916_v0  ;;  %677 = vmatprep.subr.bf16.mxu1 %v916_v0 }
  0x70   :  { %658 = vmatpush3.bf16.msra.mxu0 %v742_v9  ;;  %678 = vmatpush3.bf16.msra.mxu1 %v750_v14 }
  0x71   :  { %659 = vmatprep.subr.bf16.mxu0 %v916_v0  ;;  %679 = vmatprep.subr.bf16.mxu1 %v916_v0 }
  0x74   :  { %660 = vmatpush3.bf16.msra.mxu0 %v743_v11  ;;  %680 = vmatpush3.bf16.msra.mxu1 %v751_v16 }
  0x75   :  { %661 = vmatprep.subr.bf16.mxu0 %v916_v0  ;;  %681 = vmatprep.subr.bf16.mxu1 %v916_v0 }
  0x78   :  { %662 = vmatpush3.bf16.msra.mxu0 %v744_v13  ;;  %682 = vmatpush3.bf16.msra.mxu1 %v752_v17 }
  0x79   :  { %687 = vmatprep.subr.bf16.mxu0 %v916_v0  ;;  %707 = vmatprep.subr.bf16.mxu1 %v916_v0 }
  0x7b   :  { %664 = vmatmul.mubr.bf16.vlgmr.msra.gmra.mrb[0].mxu0 %v100_v15 }
  0x7c   :  { %703 = vmatprep.mubr.msk.bf16.mxu0 %vm917_vm0, %v916_v0  ;;  %688 = vmatpush3.bf16.msra.mxu0 %v753_v18 }
  0x7d   :  { %689 = vmatprep.subr.bf16.mxu0 %v916_v0 }
  0x80   :  { %690 = vmatpush3.bf16.msra.mxu0 %v754_v19 }
  0x81   :  { %691 = vmatprep.subr.bf16.mxu0 %v916_v0 }
  0x84   :  { %692 = vmatpush3.bf16.msra.mxu0 %v755_v20 }
  0x85   :  { %693 = vmatprep.subr.bf16.mxu0 %v916_v0 }
  0x88   :  { %694 = vmatpush3.bf16.msra.mxu0 %v756_v21 }
  0x89   :  { %695 = vmatprep.subr.bf16.mxu0 %v916_v0 }
  0x8c   :  { %696 = vmatpush3.bf16.msra.mxu0 %v757_v22 }
  0x8d   :  { %697 = vmatprep.subr.bf16.mxu0 %v916_v0 }
  0x90   :  { %698 = vmatpush3.bf16.msra.mxu0 %v758_v23 }
  0x91   :  { %699 = vmatprep.subr.bf16.mxu0 %v916_v0 }
  0x94   :  { %700 = vmatpush3.bf16.msra.mxu0 %v759_v33 }
  0x95   :  { %701 = vmatprep.subr.bf16.mxu0 %v916_v0 }
  0x98   :  { %702 = vmatpush3.bf16.msra.mxu0 %v760_v34 }
 0x14e   :  { %v206_v25 = vpop.f32.mrb[0].mxu0 }
 0x14f   :  { %v207_v26 = vadd.f32 %v575_v24, %v206_v25  ;;  %v665_v27 = vpop.f32.mrb[1].mxu0 }
 0x150   :  { %v209_v28 = vpop.f32.mrb[2].mxu0 }
 0x151   :  { %vm212_vm1 = vcmp.gt.f32.partialorder %v207_v26, 0.0  ;;  %v213_v29 = vmul.f32 0.2, %v207_v26  ;;  %v666_v30 = vpop.f32.mrb[3].mxu0 }
 0x153   :  { %v214_v31 = vsel %vm212_vm1, %v207_v26, %v213_v29 }
 0x154   :  { %v215_v32 = vpack.c.bf16 %v214_v31, %v214_v31 }
 0x156   :  { %684 = vmatmul.mubr.bf16.vlgmr.msra.gmra.mrb[0].mxu1 %v215_v32 }
 0x157   :  { %723 = vmatprep.mubr.msk.bf16.mxu1 %vm917_vm0, %v916_v0  ;;  %708 = vmatpush3.bf16.msra.mxu1 %v761_v35 }
 0x158   :  { %709 = vmatprep.subr.bf16.mxu1 %v916_v0 }
 0x15b   :  { %710 = vmatpush3.bf16.msra.mxu1 %v762_v36 }
 0x15c   :  { %711 = vmatprep.subr.bf16.mxu1 %v916_v0 }
 0x15f   :  { %712 = vmatpush3.bf16.msra.mxu1 %v763_v37 }
 0x160   :  { %713 = vmatprep.subr.bf16.mxu1 %v916_v0 }
 0x163   :  { %714 = vmatpush3.bf16.msra.mxu1 %v764_v38 }
 0x164   :  { %715 = vmatprep.subr.bf16.mxu1 %v916_v0 }
 0x167   :  { %716 = vmatpush3.bf16.msra.mxu1 %v765_v39 }
 0x168   :  { %717 = vmatprep.subr.bf16.mxu1 %v916_v0 }
 0x16b   :  { %718 = vmatpush3.bf16.msra.mxu1 %v766_v40 }
 0x16c   :  { %719 = vmatprep.subr.bf16.mxu1 %v916_v0 }
 0x16f   :  { %720 = vmatpush3.bf16.msra.mxu1 %v767_v50 }
 0x170   :  { %721 = vmatprep.subr.bf16.mxu1 %v916_v0 }
 0x173   :  { %722 = vmatpush3.bf16.msra.mxu1 %v768_v51 }
 0x229   :  { %v321_v42 = vpop.f32.mrb[0].mxu1 }
 0x22a   :  { %v322_v43 = vadd.f32 %v584_v41, %v321_v42  ;;  %v685_v44 = vpop.f32.mrb[1].mxu1 }
 0x22b   :  { %v324_v45 = vpop.f32.mrb[2].mxu1 }
 0x22c   :  { %vm327_vm2 = vcmp.gt.f32.partialorder %v322_v43, 0.0  ;;  %v328_v46 = vmul.f32 0.2, %v322_v43  ;;  %v686_v47 = vpop.f32.mrb[3].mxu1 }
 0x22e   :  { %v329_v48 = vsel %vm327_vm2, %v322_v43, %v328_v46 }
 0x22f   :  { %v330_v49 = vpack.c.bf16 %v329_v48, %v329_v48 }
 0x231   :  { %704 = vmatmul.mubr.bf16.vlgmr.msra.gmra.mrb[4].mxu0 %v330_v49 }
 0x304   :  { %v436_v53 = vpop.f32.mrb[4].mxu0 }
 0x305   :  { %v437_v54 = vadd.f32 %v593_v52, %v436_v53  ;;  %v705_v55 = vpop.f32.mrb[5].mxu0 }
 0x306   :  { %v439_v56 = vpop.f32.mrb[6].mxu0 }
 0x307   :  { %vm442_vm3 = vcmp.gt.f32.partialorder %v437_v54, 0.0  ;;  %v443_v57 = vmul.f32 0.2, %v437_v54  ;;  %v706_v58 = vpop.f32.mrb[7].mxu0 }
 0x309   :  { %v444_v59 = vsel %vm442_vm3, %v437_v54, %v443_v57 }
 0x30a   :  { %v445_v60 = vpack.c.bf16 %v444_v59, %v444_v59 }
 0x30c   :  { %724 = vmatmul.mubr.bf16.vlgmr.msra.gmra.mrb[4].mxu1 %v445_v60 }
 0x3df   :  { %v551_v62 = vpop.f32.mrb[4].mxu1 }
 0x3e0   :  { %v552_v63 = vadd.f32 %v602_v61, %v551_v62  ;;  %v725_v0 = vpop.f32.mrb[5].mxu1 }
 0x3e1   :  { %v554_v1 = vpop.f32.mrb[6].mxu1 }
 0x3e2   :  { %557 = vst [vmem:[#allocation11] sm:$0xff] %v552_v63  ;;  %v726_v2 = vpop.f32.mrb[7].mxu1 }
 0x3e3   :  { %890 = shalt.err (!%p887_p2)
}
 0x3e4   :  { %s891_s8 = scalar_lea.hbm %s1114_s9, 128 }
 0x3e5   :  { %p892_p3 = scmp.ne.s32.totalorder %s1114_s9, %s891_s8  ;;  %p895_p4 = scmp.lt.u32.totalorder %s891_s8, %s1114_s9 }
 0x3e7   :  { %p897_p5 = pnand %p895_p4, %p892_p3 }
 0x3e9   :  { %900 = shalt.err (!%p897_p5)
}
 0x3ea   :  { %567 = dma.vmem_to_hbm [thread:$0]  %s565_s12, 128, %s1114_s9, [#allocation4]  }
 0x3eb   :  { %907 = dma.done.wait [#allocation4], 128  }
 0x3ec   :  { %908 = vsyncadd [#allocation4], 4294967168 }
 0x3ed   :  { %571 = vsyncpa [#allocation3], 1 }
 0x3ee   :  { %572 = vsyncpa [#allocation6], 1 }
 0x3ef   :  { %573 = vsyncpa [#allocation9], 1 }
 0x3f0   :  { %574 = vsyncpa [#allocation4], 1 }

</bundles_post_ra>
